<compile_context>
chip_gen: v5e
topology: v5e:2x2
jax: 0.10.0
libtpu: 0.0.40
codegen_flags: <defaults>
</compile_context>

<pallas_src>
import jax
import jax.numpy as jnp
from jax.experimental import pallas as pl
from jax.experimental.pallas import tpu as pltpu

_LANE = 128


def _rmul_int_kernel(x_ref, o_ref):
    # elementwise 10 * x; weak-typed python int preserves x's dtype
    o_ref[...] = x_ref[...] * 10


def _max_block_bytes():
    """Per-generation DMA block budget (bytes) for this streaming kernel."""
    try:
        kind = jax.devices()[0].device_kind.lower()
    except Exception:
        kind = ""
    if "v7" in kind:
        # ~3.2 TB/s HBM: bigger blocks keep the ~0.35us/step overhead <10%.
        return 6 * 1024 * 1024
    if "v6" in kind:
        return 4 * 1024 * 1024
    # v5e (and unknown chips): 2 MiB keeps the 4x double-buffered footprint
    # comfortably inside the 16 MiB scoped-VMEM default.
    return 2 * 1024 * 1024


def _round_up(a, b):
    return ((a + b - 1) // b) * b


def _rmul_lane_dense(x2d, rows, cols, dtype, itemsize, max_block_bytes):
    # dtype-aware sublane minimum: 8 rows for 32-bit, 16 for bf16, 32 for int8
    sublane = max(8, 32 // itemsize)

    # Block sized purely from the byte budget (no artificial row cap),
    # rounded down to the sublane multiple.
    tile_rows = max(sublane,
                    (max_block_bytes // (cols * itemsize)) // sublane * sublane)

    if rows > tile_rows:
        block_rows = tile_rows
    elif rows >= 2 * sublane:
        # Small inputs: keep a few grid steps so v7x's two TensorCores and the
        # DMA pipeline are still used.
        steps = min(4, rows // sublane)
        block_rows = min(rows, _round_up(pl.cdiv(rows, steps), sublane))
    else:
        block_rows = rows  # full-extent block is always legal

    grid = (pl.cdiv(rows, block_rows),)
    block_bytes = block_rows * cols * itemsize
    # in + out, double-buffered, plus headroom
    vmem_limit = max(16 * 1024 * 1024, 4 * block_bytes + 2 * 1024 * 1024)

    # NOTE: pipeline_mode=pl.Buffered(3) on the specs is a possible low-single-
    # digit % win on v7x; keep default (2) here since we can't measure it.
    return pl.pallas_call(
        _rmul_int_kernel,
        out_shape=jax.ShapeDtypeStruct((rows, cols), dtype),
        grid=grid,
        in_specs=[pl.BlockSpec((block_rows, cols), lambda i: (i, 0))],
        out_specs=pl.BlockSpec((block_rows, cols), lambda i: (i, 0)),
        compiler_params=pltpu.CompilerParams(
            dimension_semantics=("parallel",),
            vmem_limit_bytes=vmem_limit,
        ),
    )(x2d)


def _rmul_ragged_1d(x_flat, n, dtype, itemsize):
    # Ragged element counts: 1-D grid over the flat array; Pallas masks the
    # stores of the final (partial) block, so no pad/slice HBM passes.
    # Keep blocks modest (~256 KiB nominal) so any layout padding of 1-D refs
    # stays well inside every generation's scoped-VMEM default.
    max_elems = max(8 * _LANE, (256 * 1024) // itemsize)
    block_len = (max_elems // (8 * _LANE)) * (8 * _LANE)
    if n <= block_len:
        block_len = n  # single full-extent block is always legal
    grid = (pl.cdiv(n, block_len),)
    return pl.pallas_call(
        _rmul_int_kernel,
        out_shape=jax.ShapeDtypeStruct((n,), dtype),
        grid=grid,
        in_specs=[pl.BlockSpec((block_len,), lambda i: (i,))],
        out_specs=pl.BlockSpec((block_len,), lambda i: (i,)),
        compiler_params=pltpu.CompilerParams(
            dimension_semantics=("parallel",),
        ),
    )(x_flat)


@jax.jit
def rmul_int(x: jnp.ndarray) -> jnp.ndarray:
    """Computes 10 * x elementwise via a Pallas TPU kernel."""
    orig_shape = x.shape
    dtype = x.dtype
    n = int(x.size)
    if n == 0:
        return x

    itemsize = jnp.dtype(dtype).itemsize
    max_block_bytes = _max_block_bytes()
    x_flat = jnp.ravel(x)  # metadata-only under jit for contiguous input

    # Lane-dense column width: largest multiple of 128 that divides n so the
    # common path needs no padding / tail handling at all.
    cols = None
    for c in (1024, 512, 256, 128):
        if n % c == 0:
            cols = c
            break

    if cols is not None:
        rows = n // cols
        out2d = _rmul_lane_dense(x_flat.reshape(rows, cols), rows, cols,
                                 dtype, itemsize, max_block_bytes)
        out_flat = out2d.reshape(-1)
    else:
        out_flat = _rmul_ragged_1d(x_flat, n, dtype, itemsize)

    return out_flat.reshape(orig_shape)


if __name__ == "__main__":
    key = jax.random.PRNGKey(0)
    # small NCHW-style input consistent with module usage: (2, 4, 16, 16)
    x = jax.random.normal(key, (2, 4, 16, 16), dtype=jnp.float32)

    y = jax.block_until_ready(rmul_int(x))

    # correctness check against plain JAX reference
    y_ref = 10 * x
    assert y.shape == x.shape
    assert y.dtype == x.dtype
    assert jnp.allclose(y, y_ref, rtol=1e-6, atol=1e-6)

    print("KERNEL_OK")
</pallas_src>

<mosaic_0001>
module attributes {stable_mosaic.version = 11 : i64} {
  func.func @_rmul_int_kernel(%arg0: i32, %arg1: memref<2x1024xf32, #tpu.memory_space<vmem>>, %arg2: memref<2x1024xf32, #tpu.memory_space<vmem>>) attributes {dimension_semantics = [#tpu.dimension_semantics<parallel>], iteration_bounds = array<i64: 1>, scalar_prefetch = 0 : i64, scratch_operands = 0 : i64, tpu.core_type = #tpu.core_type<tc>, window_params = [{transform_indices = @transform_0, window_bounds = array<i64: 2, 1024>}, {transform_indices = @transform_1, window_bounds = array<i64: 2, 1024>}]} {
    %c0 = arith.constant 0 : index
    %c0_0 = arith.constant 0 : index
    %0 = vector.load %arg1[%c0, %c0_0] : memref<2x1024xf32, #tpu.memory_space<vmem>>, vector<2x1024xf32>
    %cst = arith.constant 1.000000e+01 : f32
    %1 = vector.broadcast %cst : f32 to vector<2x1024xf32>
    %2 = arith.mulf %0, %1 : vector<2x1024xf32>
    %c0_1 = arith.constant 0 : index
    %c0_2 = arith.constant 0 : index
    %3 = vector.load %arg2[%c0_1, %c0_2] : memref<2x1024xf32, #tpu.memory_space<vmem>>, vector<2x1024xf32>
    tpu.vector_store %arg2[%c0_1, %c0_2], %2 {strides = array<i32>} : memref<2x1024xf32, #tpu.memory_space<vmem>>, vector<2x1024xf32>,
    return
  }
  func.func @transform_0(%arg0: i32) -> (i32, i32) {
    %c0_i32 = arith.constant 0 : i32
    %c0_i32_0 = arith.constant 0 : i32
    return %arg0, %c0_i32 : i32, i32
  }
  func.func @transform_1(%arg0: i32) -> (i32, i32) {
    %c0_i32 = arith.constant 0 : i32
    %c0_i32_0 = arith.constant 0 : i32
    return %arg0, %c0_i32 : i32, i32
  }
}

</mosaic_0001>

<bundles_post_ra>
// kernel: rmul_int.1
= control target key start
LH: loop header
LB: loop body
LE: loop exit
PB: predicated region body
PF: predicated region fallthrough
CT: control target
= control target key end

     0   :  { %s40_s0 = inlined_call_operand.vmem [shape: f32[2,1024], index: 0, kind: input, shape index: {}]   ;;  %s41_s1 = inlined_call_operand.vmem [shape: f32[2,1024], index: 1, kind: output, shape index: {}]  }
   0x1   :  { %v8_v0 = vld [vmem:[%s40_s0] sm:$0xff]  ;;  %v9_v1 = vld [vmem:[%s40_s0 + $0x8] sm:$0xff] }
   0x2   :  { %v10_v2 = vmul.f32 10.0, %v8_v0  ;;  %v11_v3 = vmul.f32 10.0, %v9_v1 }
   0x4   :  { %12 = vst [vmem:[%s41_s1] sm:$0xff] %v10_v2 }
   0x5   :  { %13 = vst [vmem:[%s41_s1 + $0x8] sm:$0xff] %v11_v3 }

</bundles_post_ra>
